<compile_context>
chip_gen: v5e
topology: v5e:2x2
jax: 0.10.0
libtpu: 0.0.40
codegen_flags: <defaults>
</compile_context>

<pallas_src>
import functools

import jax
import jax.numpy as jnp
from jax.experimental import pallas as pl
from jax.experimental.pallas import tpu as pltpu

_LANE = 128
_SUBLANE = 8
_NEG_BIG = -1e30  # pad-lane bias for the last layer -> exp() underflows to 0


def _round_up(x, m):
    return (x + m - 1) // m * m


def _actor_kernel(x_ref, w1_ref, w2_ref, w3_ref, b_ref, o_ref, *, hidden_pad, act_pad):
    # x_ref: (bt, S) f32; w*: bf16 (padded); b_ref: (3, W) f32 packed biases;
    # o_ref: (bt, act_pad) bf16 (lane-dense, act_pad is a multiple of 128).
    x = x_ref[...].astype(jnp.bfloat16)  # in-kernel cast: f32 HBM read, bf16 MXU input

    b1 = b_ref[0:1, :hidden_pad]
    b2 = b_ref[1:2, :hidden_pad]
    b3 = b_ref[2:3, :act_pad]

    # Layer 1: Linear + ReLU (bf16 MXU inputs, f32 accumulation)
    h1 = jnp.dot(x, w1_ref[...], preferred_element_type=jnp.float32) + b1
    h1 = jnp.maximum(h1, 0.0).astype(jnp.bfloat16)

    # Layer 2: Linear + ReLU
    h2 = jnp.dot(h1, w2_ref[...], preferred_element_type=jnp.float32) + b2
    h2 = jnp.maximum(h2, 0.0).astype(jnp.bfloat16)

    # Layer 3: Linear (pad lanes carry -1e30 bias -> exactly 0 probability)
    logits = jnp.dot(h2, w3_ref[...], preferred_element_type=jnp.float32) + b3

    # Numerically stabilized softmax over the (padded) action axis, all in f32.
    m = jnp.max(logits, axis=-1, keepdims=True)
    e = jnp.exp(logits - m)
    denom = jnp.sum(e, axis=-1, keepdims=True)
    o_ref[...] = (e / denom).astype(o_ref.dtype)  # exact division; bf16 only at the store


def prepare_actor_params(params):
    """One-time parameter prep (hoisted out of the per-call forward path).

    Pads weights to 128-lane multiples, casts them to bf16, and packs the three
    biases into one (3, W) f32 buffer with -1e30 on padded action lanes.
    """
    w1, b1, w2, b2, w3, b3 = params
    S, H = w1.shape
    A = w3.shape[1]

    Hp = _round_up(H, _LANE)
    Ap = _round_up(A, _LANE)
    W = max(Hp, Ap)

    w1p = jnp.zeros((S, Hp), jnp.bfloat16).at[:, :H].set(w1.astype(jnp.bfloat16))
    w2p = jnp.zeros((Hp, Hp), jnp.bfloat16).at[:H, :H].set(w2.astype(jnp.bfloat16))
    w3p = jnp.zeros((Hp, Ap), jnp.bfloat16).at[:H, :A].set(w3.astype(jnp.bfloat16))

    bias = jnp.zeros((3, W), jnp.float32)
    bias = bias.at[0, :H].set(b1.reshape(-1))
    bias = bias.at[1, :H].set(b2.reshape(-1))
    bias = bias.at[2, :].set(_NEG_BIG)          # suppress padded action lanes
    bias = bias.at[2, :A].set(b3.reshape(-1))

    return {"w1": w1p, "w2": w2p, "w3": w3p, "bias": bias, "action_dim": int(A)}


def _default_batch_tile(B):
    # Small B: one grid step (latency-bound).  Large B: keep >=2 steps so
    # megacore (v7x) / the BlockSpec pipeline (v6e) get work, capped at 256
    # rows so the (bt, 128) f32 intermediates stay vreg-friendly on v5e.
    if B <= 256:
        return _round_up(B, _SUBLANE)
    return min(_round_up(pl.cdiv(B, 2), _SUBLANE), 256)


@functools.partial(jax.jit, static_argnames=("action_dim", "batch_tile"))
def actor_forward(state, w1p, w2p, w3p, bias, *, action_dim, batch_tile=None):
    """state: [B, state_dim] float32 -> action_probs: [B, action_dim] float32."""
    B, S = state.shape
    Hp = w1p.shape[1]
    Ap = w3p.shape[1]
    W = bias.shape[1]
    A = action_dim

    if batch_tile is None:
        batch_tile = _default_batch_tile(B)
    batch_tile = _round_up(batch_tile, _SUBLANE)
    B_pad = _round_up(B, batch_tile)

    x = state
    if B_pad != B:
        x = jnp.pad(x, ((0, B_pad - B), (0, 0)))

    grid = (B_pad // batch_tile,)
    kernel = functools.partial(_actor_kernel, hidden_pad=Hp, act_pad=Ap)

    # VMEM footprint is tiny (<0.5 MiB at batch_tile=256: ~72 KB resident
    # weights, 2x f32 state tiles + 2x bf16 output tiles), so the default
    # scoped VMEM limit is fine on v5e/v6e/v7x.
    out = pl.pallas_call(
        kernel,
        out_shape=jax.ShapeDtypeStruct((B_pad, Ap), jnp.bfloat16),
        grid_spec=pltpu.PrefetchScalarGridSpec(
            num_scalar_prefetch=0,
            grid=grid,
            in_specs=[
                pl.BlockSpec((batch_tile, S), lambda i: (i, 0)),  # state tile (f32)
                pl.BlockSpec((S, Hp), lambda i: (0, 0)),          # w1 (resident)
                pl.BlockSpec((Hp, Hp), lambda i: (0, 0)),         # w2 (resident)
                pl.BlockSpec((Hp, Ap), lambda i: (0, 0)),         # w3 (resident)
                pl.BlockSpec((3, W), lambda i: (0, 0)),           # packed biases
            ],
            out_specs=pl.BlockSpec((batch_tile, Ap), lambda i: (i, 0)),
        ),
        compiler_params=pltpu.CompilerParams(
            dimension_semantics=("parallel",),  # shards batch steps across v7x TCs
        ),
    )(x, w1p, w2p, w3p, bias)

    # Tiny op: reads B*A bf16, writes B*A f32 (negligible vs. the kernel streams).
    return out[:B, :A].astype(jnp.float32)


def init_actor_params(key, state_dim, action_dim, hidden_dim=64):
    """Deterministic init mimicking PyTorch nn.Linear default (U(-1/sqrt(fan_in), +))."""
    keys = jax.random.split(key, 6)

    def linear(kw, kb, fan_in, fan_out):
        bound = 1.0 / jnp.sqrt(jnp.float32(fan_in))
        w = jax.random.uniform(kw, (fan_in, fan_out), jnp.float32, -bound, bound)
        b = jax.random.uniform(kb, (1, fan_out), jnp.float32, -bound, bound)
        return w, b

    w1, b1 = linear(keys[0], keys[1], state_dim, hidden_dim)
    w2, b2 = linear(keys[2], keys[3], hidden_dim, hidden_dim)
    w3, b3 = linear(keys[4], keys[5], hidden_dim, action_dim)
    return (w1, b1, w2, b2, w3, b3)


def actor_reference(state, params):
    """Pure-f32 JAX reference (exact module semantics)."""
    w1, b1, w2, b2, w3, b3 = params
    h1 = jnp.maximum(state @ w1 + b1, 0.0)
    h2 = jnp.maximum(h1 @ w2 + b2, 0.0)
    logits = h2 @ w3 + b3
    return jax.nn.softmax(logits, axis=-1)


def actor_reference_quantized(state, params):
    """Reference matching the kernel's bf16 input/weight/activation quantization."""
    w1, b1, w2, b2, w3, b3 = params
    q = lambda a: a.astype(jnp.bfloat16).astype(jnp.float32)
    x = q(state)
    h1 = q(jnp.maximum(x @ q(w1) + b1, 0.0))
    h2 = q(jnp.maximum(h1 @ q(w2) + b2, 0.0))
    logits = h2 @ q(w3) + b3
    return jax.nn.softmax(logits, axis=-1)


if __name__ == "__main__":
    key = jax.random.PRNGKey(0)
    k_params, k_state = jax.random.split(key)

    batch = 8
    state_dim = 32
    action_dim = 8
    hidden_dim = 64

    params = init_actor_params(k_params, state_dim, action_dim, hidden_dim)
    prepared = prepare_actor_params(params)  # one-time prep, outside the forward path
    state = jax.random.normal(k_state, (batch, state_dim), jnp.float32)

    probs = jax.block_until_ready(
        actor_forward(
            state,
            prepared["w1"], prepared["w2"], prepared["w3"], prepared["bias"],
            action_dim=prepared["action_dim"],
        )
    )

    ref_q = actor_reference_quantized(state, params)
    ref_f32 = actor_reference(state, params)

    assert probs.shape == (batch, action_dim)
    # Check vs a quantization-matched reference (bf16 inputs/activations, f32
    # accum; kernel additionally rounds the stored probs to bf16).
    assert jnp.allclose(probs, ref_q, atol=4e-3, rtol=1e-2)
    # Looser sanity check vs the exact f32 PyTorch-equivalent forward.
    assert jnp.allclose(probs, ref_f32, atol=2e-2, rtol=2e-2)
    # Rows sum to ~1 (exact division in f32; only the bf16 output rounding remains).
    assert jnp.allclose(jnp.sum(probs, axis=-1), 1.0, atol=5e-3)

    print("KERNEL_OK")
</pallas_src>

<mosaic_0001>
module attributes {stable_mosaic.version = 11 : i64} {
  func.func @_actor_kernel(%arg0: i32, %arg1: memref<8x32xf32, #tpu.memory_space<vmem>>, %arg2: memref<32x128xbf16, #tpu.memory_space<vmem>>, %arg3: memref<128x128xbf16, #tpu.memory_space<vmem>>, %arg4: memref<128x128xbf16, #tpu.memory_space<vmem>>, %arg5: memref<3x128xf32, #tpu.memory_space<vmem>>, %arg6: memref<8x128xbf16, #tpu.memory_space<vmem>>) attributes {dimension_semantics = [#tpu.dimension_semantics<parallel>], iteration_bounds = array<i64: 1>, scalar_prefetch = 0 : i64, scratch_operands = 0 : i64, tpu.core_type = #tpu.core_type<tc>, window_params = [{transform_indices = @transform_0, window_bounds = array<i64: 8, 32>}, {pipeline_mode = #tpu.pipeline_mode<synchronous>, transform_indices = @transform_1, window_bounds = array<i64: 32, 128>}, {pipeline_mode = #tpu.pipeline_mode<synchronous>, transform_indices = @transform_2, window_bounds = array<i64: 128, 128>}, {pipeline_mode = #tpu.pipeline_mode<synchronous>, transform_indices = @transform_3, window_bounds = array<i64: 128, 128>}, {pipeline_mode = #tpu.pipeline_mode<synchronous>, transform_indices = @transform_4, window_bounds = array<i64: 3, 128>}, {transform_indices = @transform_5, window_bounds = array<i64: 8, 128>}]} {
    %c0 = arith.constant 0 : index
    %c0_0 = arith.constant 0 : index
    %0 = vector.load %arg1[%c0, %c0_0] : memref<8x32xf32, #tpu.memory_space<vmem>>, vector<8x32xf32>
    %1 = arith.truncf %0 : vector<8x32xf32> to vector<8x32xbf16>
    %c0_1 = arith.constant 0 : index
    %c0_2 = arith.constant 0 : index
    %2 = vector.load %arg5[%c0_1, %c0_2] : memref<3x128xf32, #tpu.memory_space<vmem>>, vector<1x128xf32>
    %c1 = arith.constant 1 : index
    %c0_3 = arith.constant 0 : index
    %3 = vector.load %arg5[%c1, %c0_3] : memref<3x128xf32, #tpu.memory_space<vmem>>, vector<1x128xf32>
    %c2 = arith.constant 2 : index
    %c0_4 = arith.constant 0 : index
    %4 = vector.load %arg5[%c2, %c0_4] : memref<3x128xf32, #tpu.memory_space<vmem>>, vector<1x128xf32>
    %c0_5 = arith.constant 0 : index
    %c0_6 = arith.constant 0 : index
    %5 = vector.load %arg2[%c0_5, %c0_6] : memref<32x128xbf16, #tpu.memory_space<vmem>>, vector<32x128xbf16>
    %cst = arith.constant dense<0.000000e+00> : vector<8x128xf32>
    %6 = tpu.matmul %1, %5, %cst {dimension_numbers = #tpu.dot_dimension_numbers<[1], [0], [0], [1], [0, 0, 1, 1], [], []>} : vector<8x32xbf16>, vector<32x128xbf16>, vector<8x128xf32> -> vector<8x128xf32>
    %7 = vector.broadcast %2 : vector<1x128xf32> to vector<8x128xf32>
    %8 = arith.addf %6, %7 : vector<8x128xf32>
    %cst_7 = arith.constant 0.000000e+00 : f32
    %9 = vector.broadcast %cst_7 : f32 to vector<8x128xf32>
    %10 = arith.maximumf %8, %9 : vector<8x128xf32>
    %11 = arith.truncf %10 : vector<8x128xf32> to vector<8x128xbf16>
    %c0_8 = arith.constant 0 : index
    %c0_9 = arith.constant 0 : index
    %12 = vector.load %arg3[%c0_8, %c0_9] : memref<128x128xbf16, #tpu.memory_space<vmem>>, vector<128x128xbf16>
    %cst_10 = arith.constant dense<0.000000e+00> : vector<8x128xf32>
    %13 = tpu.matmul %11, %12, %cst_10 {dimension_numbers = #tpu.dot_dimension_numbers<[1], [0], [0], [1], [0, 0, 1, 1], [], []>} : vector<8x128xbf16>, vector<128x128xbf16>, vector<8x128xf32> -> vector<8x128xf32>
    %14 = vector.broadcast %3 : vector<1x128xf32> to vector<8x128xf32>
    %15 = arith.addf %13, %14 : vector<8x128xf32>
    %cst_11 = arith.constant 0.000000e+00 : f32
    %16 = vector.broadcast %cst_11 : f32 to vector<8x128xf32>
    %17 = arith.maximumf %15, %16 : vector<8x128xf32>
    %18 = arith.truncf %17 : vector<8x128xf32> to vector<8x128xbf16>
    %c0_12 = arith.constant 0 : index
    %c0_13 = arith.constant 0 : index
    %19 = vector.load %arg4[%c0_12, %c0_13] : memref<128x128xbf16, #tpu.memory_space<vmem>>, vector<128x128xbf16>
    %cst_14 = arith.constant dense<0.000000e+00> : vector<8x128xf32>
    %20 = tpu.matmul %18, %19, %cst_14 {dimension_numbers = #tpu.dot_dimension_numbers<[1], [0], [0], [1], [0, 0, 1, 1], [], []>} : vector<8x128xbf16>, vector<128x128xbf16>, vector<8x128xf32> -> vector<8x128xf32>
    %21 = vector.broadcast %4 : vector<1x128xf32> to vector<8x128xf32>
    %22 = arith.addf %20, %21 : vector<8x128xf32>
    %cst_15 = arith.constant dense<0xFF800000> : vector<8xf32>
    %23 = vector.multi_reduction <maximumf>, %22, %cst_15 [1] : vector<8x128xf32> to vector<8xf32>
    %24 = vector.shape_cast %23 : vector<8xf32> to vector<8x1xf32>
    %25 = vector.broadcast %24 : vector<8x1xf32> to vector<8x128xf32>
    %26 = arith.subf %22, %25 : vector<8x128xf32>
    %27 = math.exp %26 : vector<8x128xf32>
    %cst_16 = arith.constant dense<0.000000e+00> : vector<8xf32>
    %28 = vector.multi_reduction <add>, %27, %cst_16 [1] : vector<8x128xf32> to vector<8xf32>
    %29 = vector.shape_cast %28 : vector<8xf32> to vector<8x1xf32>
    %30 = vector.broadcast %29 : vector<8x1xf32> to vector<8x128xf32>
    %31 = arith.divf %27, %30 : vector<8x128xf32>
    %32 = arith.truncf %31 : vector<8x128xf32> to vector<8x128xbf16>
    %c0_17 = arith.constant 0 : index
    %c0_18 = arith.constant 0 : index
    %33 = vector.load %arg6[%c0_17, %c0_18] : memref<8x128xbf16, #tpu.memory_space<vmem>>, vector<8x128xbf16>
    tpu.vector_store %arg6[%c0_17, %c0_18], %32 {strides = array<i32>} : memref<8x128xbf16, #tpu.memory_space<vmem>>, vector<8x128xbf16>,
    return
  }
  func.func @transform_0(%arg0: i32) -> (i32, i32) {
    %c0_i32 = arith.constant 0 : i32
    %c0_i32_0 = arith.constant 0 : i32
    return %arg0, %c0_i32 : i32, i32
  }
  func.func @transform_1(%arg0: i32) -> (i32, i32) {
    %c0_i32 = arith.constant 0 : i32
    %c0_i32_0 = arith.constant 0 : i32
    %c0_i32_1 = arith.constant 0 : i32
    return %c0_i32, %c0_i32_0 : i32, i32
  }
  func.func @transform_2(%arg0: i32) -> (i32, i32) {
    %c0_i32 = arith.constant 0 : i32
    %c0_i32_0 = arith.constant 0 : i32
    %c0_i32_1 = arith.constant 0 : i32
    return %c0_i32, %c0_i32_0 : i32, i32
  }
  func.func @transform_3(%arg0: i32) -> (i32, i32) {
    %c0_i32 = arith.constant 0 : i32
    %c0_i32_0 = arith.constant 0 : i32
    %c0_i32_1 = arith.constant 0 : i32
    return %c0_i32, %c0_i32_0 : i32, i32
  }
  func.func @transform_4(%arg0: i32) -> (i32, i32) {
    %c0_i32 = arith.constant 0 : i32
    %c0_i32_0 = arith.constant 0 : i32
    %c0_i32_1 = arith.constant 0 : i32
    return %c0_i32, %c0_i32_0 : i32, i32
  }
  func.func @transform_5(%arg0: i32) -> (i32, i32) {
    %c0_i32 = arith.constant 0 : i32
    %c0_i32_0 = arith.constant 0 : i32
    return %arg0, %c0_i32 : i32, i32
  }
}

</mosaic_0001>

<bundles_post_ra>
// kernel: actor_forward.1
= control target key start
LH: loop header
LB: loop body
LE: loop exit
PB: predicated region body
PF: predicated region fallthrough
CT: control target
= control target key end

     0   :  { %10 = vsyncpa [#allocation3], 0  ;;  %s611_s0 = inlined_call_operand.hbm [shape: f32[8,32], index: 0, kind: input, shape index: {}]   ;;  %s612_s1 = inlined_call_operand.hbm [shape: bf16[32,128], index: 1, kind: input, shape index: {}]   ;;  %s613_s2 = inlined_call_operand.hbm [shape: bf16[128,128], index: 2, kind: input, shape index: {}]   ;;  %s614_s3 = inlined_call_operand.hbm [shape: bf16[128,128], index: 3, kind: input, shape index: {}]   ;;  %s615_s4 = inlined_call_operand.hbm [shape: f32[3,128], index: 4, kind: input, shape index: {}]   ;;  %s616_s5 = inlined_call_operand.vmem [shape: bf16[8,128], index: 5, kind: output, shape index: {}]  }
   0x1   :  { %11 = vsyncpa [#allocation5], 0  ;;  %s28_s20 = sshll.u32 %s612_s1, 4  ;;  %s29_s20 = int_to_ptr.hbm [resolvable:$true] %s28_s20 }
   0x2   :  { %12 = vsyncpa [#allocation8], 0  ;;  %s556_s21 = smov [#allocation4]   ;;  %s54_s25 = sshll.u32 %s614_s3, 4  ;;  %s55_s25 = int_to_ptr.hbm [resolvable:$true] %s54_s25 }
   0x3   :  { %s30_s22 = sshll.u32 %s556_s21, 4  ;;  %s557_s26 = smov 64   ;;  %s31_s22 = int_to_ptr.vmem [resolvable:$true] %s30_s22 }
   0x4   :  { %s558_s27 = smov 4   ;;  %s559_s28 = smov [#allocation7]  }
   0x5   :  { %36 = dma.hbm_to_vmem [thread:$0]  %s29_s20, 256, %s31_s22, [#allocation5], %s557_s26, %s557_s26, %s558_s27  }
   0x6   :  { %s56_s29 = sshll.u32 %s559_s28, 4  ;;  %s18_s7 = sshll.u32 %s611_s0, 4  ;;  %s57_s29 = int_to_ptr.vmem [resolvable:$true] %s56_s29  ;;  %s19_s7 = int_to_ptr.hbm [resolvable:$true] %s18_s7 }
   0x7   :  { %62 = dma.hbm_to_vmem [thread:$0]  %s55_s25, 1024, %s57_s29, [#allocation8], %s557_s26, %s557_s26, %s558_s27  }
   0x8   :  { %s41_s9 = sshll.u32 %s613_s2, 4  ;;  %s560_s10 = smov [#allocation2]   ;;  %s42_s9 = int_to_ptr.hbm [resolvable:$true] %s41_s9 }
   0x9   :  { %s20_s11 = sshll.u32 %s560_s10, 4  ;;  %s561_s3 = smov [#allocation6]   ;;  %s21_s11 = int_to_ptr.vmem [resolvable:$true] %s20_s11 }
   0xa   :  { %23 = dma.hbm_to_vmem [thread:$0]  %s19_s7, 128, %s21_s11, [#allocation3]  }
   0xb   :  { %s43_s12 = sshll.u32 %s561_s3, 4  ;;  %s68_s15 = sshll.u32 %s615_s4, 4  ;;  %s44_s12 = int_to_ptr.vmem [resolvable:$true] %s43_s12  ;;  %s69_s15 = int_to_ptr.hbm [resolvable:$true] %s68_s15 }
   0xc   :  { %49 = dma.hbm_to_vmem [thread:$0]  %s42_s9, 1024, %s44_s12, [#allocation5], %s557_s26, %s557_s26, %s558_s27  }
   0xd   :  { %s562_s0 = smov [#allocation9]  }
   0xe   :  { %s70_s16 = sshll.u32 %s562_s0, 4  ;;  %s71_s16 = int_to_ptr.vmem [resolvable:$true] %s70_s16 }
   0xf   :  { %73 = dma.hbm_to_vmem [thread:$0]  %s69_s15, 64, %s71_s16, [#allocation8]  }
  0x10   :  { %550 = dma.done.wait [#allocation3], 128  }
  0x11   :  { %551 = vsyncadd [#allocation3], 4294967168 }
  0x12   :  { %552 = dma.done.wait [#allocation5], 1280  }
  0x13   :  { %553 = vsyncadd [#allocation5], 4294966016 }
  0x14   :  { %554 = dma.done.wait [#allocation8], 1088  }
  0x15   :  { %555 = vsyncadd [#allocation8], 4294966208  ;;  %v399_v0 = vld [vmem:[#allocation4 + $0x8] sm:$0xff]  ;;  %v398_v2 = vld [vmem:[#allocation4] sm:$0xff]  ;;  %vm117_vm0 = vcmask 261120  }
  0x16   :  { %v407_v1 = vld [vmem:[#allocation6 + $0x38] sm:$0xff]  ;;  %127 = vmatpush.bf16.msra.mxu0 %v399_v0  ;;  %v95_v3 = vld [vmem:[#allocation2] sm:$0xff]  ;;  %v406_v4 = vld [vmem:[#allocation6 + $0x30] sm:$0xff] }
  0x17   :  { %201 = vmatpush.bf16.msra.mxu1 %v407_v1  ;;  %v96_v5 = vpack.c.bf16 %v95_v3, %v95_v3  ;;  %v405_v6 = vld [vmem:[#allocation6 + $0x28] sm:$0xff]  ;;  %v404_v7 = vld [vmem:[#allocation6 + $0x20] sm:$0xff]  ;;  %v403_v8 = vld [vmem:[#allocation6 + $0x18] sm:$0xff] }
  0x18   :  { %v402_v9 = vld [vmem:[#allocation6 + $0x10] sm:$0xff]  ;;  %v401_v10 = vld [vmem:[#allocation6 + $0x8] sm:$0xff]  ;;  %v400_v11 = vld [vmem:[#allocation6] sm:$0xff] }
  0x19   :  { %v415_v12 = vld [vmem:[#allocation7 + $0x38] sm:$0xff]  ;;  %v414_v13 = vld [vmem:[#allocation7 + $0x30] sm:$0xff]  ;;  %v413_v14 = vld [vmem:[#allocation7 + $0x28] sm:$0xff] }
  0x1a   :  { %128 = vmatpush.bf16.msra.mxu0 %v398_v2  ;;  %281 = vmatpush.bf16.msra.mxu2 %v415_v12  ;;  %v412_v15 = vld [vmem:[#allocation7 + $0x20] sm:$0xff]  ;;  %v411_v16 = vld [vmem:[#allocation7 + $0x18] sm:$0xff]  ;;  %v410_v17 = vld [vmem:[#allocation7 + $0x10] sm:$0xff] }
  0x1b   :  { %202 = vmatpush.bf16.msra.mxu1 %v406_v4  ;;  %v423_v18 = vld [vmem:[#allocation9] ss:$0 sm:$0xff]  ;;  %v409_v24 = vld [vmem:[#allocation7 + $0x8] sm:$0xff]  ;;  %v424_v26 = vld [vmem:[#allocation9 + $0x1] ss:$0 sm:$0xff] }
  0x1c   :  { %v408_v25 = vld [vmem:[#allocation7] sm:$0xff] }
  0x1d   :  { %333 = vmatmul.msk.bf16.vlgmr.msra.gmra.mxu0 %vm117_vm0, %v96_v5  ;;  %v425_v32 = vld [vmem:[#allocation9 + $0x2] ss:$0 sm:$0xff] }
  0x1e   :  { %282 = vmatpush.bf16.msra.mxu2 %v414_v13 }
  0x1f   :  { %203 = vmatpush.bf16.msra.mxu1 %v405_v6 }
  0x22   :  { %283 = vmatpush.bf16.msra.mxu2 %v413_v14 }
  0x23   :  { %204 = vmatpush.bf16.msra.mxu1 %v404_v7 }
  0x26   :  { %284 = vmatpush.bf16.msra.mxu2 %v412_v15 }
  0x27   :  { %205 = vmatpush.bf16.msra.mxu1 %v403_v8 }
  0x2a   :  { %285 = vmatpush.bf16.msra.mxu2 %v411_v16 }
  0x2b   :  { %206 = vmatpush.bf16.msra.mxu1 %v402_v9 }
  0x2e   :  { %286 = vmatpush.bf16.msra.mxu2 %v410_v17 }
  0x2f   :  { %207 = vmatpush.bf16.msra.mxu1 %v401_v10 }
  0x32   :  { %287 = vmatpush.bf16.msra.mxu2 %v409_v24 }
  0x33   :  { %208 = vmatpush.bf16.msra.mxu1 %v400_v11 }
  0x36   :  { %288 = vmatpush.bf16.msra.mxu2 %v408_v25 }
  0x9a   :  { %v130_v19 = vpop.f32.mrf.mxu0 }
  0x9b   :  { %v131_v20 = vadd.f32 %v423_v18, %v130_v19 }
  0x9d   :  { %v134_v21 = vmax.f32 %v131_v20, 0.0 }
  0x9f   :  { %v135_v22 = vpack.c.bf16 %v134_v21, %v134_v21 }
  0xa1   :  { %209 = vmatmul.bf16.vlgmr.msra.gmra.mxu1 %v135_v22 }
  0xa2   :  { %v132_v23 = vpop.f32.mrf.mxu0 }
 0x11e   :  { %v210_v27 = vpop.f32.mrf.mxu1 }
 0x11f   :  { %v211_v28 = vadd.f32 %v424_v26, %v210_v27 }
 0x121   :  { %v214_v29 = vmax.f32 %v211_v28, 0.0 }
 0x123   :  { %v215_v30 = vpack.c.bf16 %v214_v29, %v214_v29 }
 0x125   :  { %289 = vmatmul.bf16.vlgmr.msra.gmra.mxu2 %v215_v30 }
 0x126   :  { %v212_v31 = vpop.f32.mrf.mxu1 }
 0x1a8   :  { %v290_v33 = vpop.f32.mrf.mxu2 }
 0x1a9   :  { %v291_v34 = vadd.f32 %v425_v32, %v290_v33 }
 0x1ab   :  { %294 = vmax.xlane.f32.xlu0 %v291_v34 }
 0x1b0   :  { %v292_v35 = vpop.f32.mrf.mxu2 }
 0x21e   :  { %v295_v36 = vpop.xlane.xlu0 %294 }
 0x21f   :  { %v296_v37 = vsub.f32 %v291_v34, %v295_v36 }
 0x221   :  { %v297_v38 = vmul.f32 1.442695, %v296_v37 }
 0x223   :  { %426 = vpow2.f32 %v297_v38 }
 0x229   :  { %v427_v39 = vpop.eup %426 }
 0x22a   :  { %299 = vadd.xlane.f32.xlu0 %v427_v39 }
 0x29d   :  { %v300_v40 = vpop.xlane.xlu0 %299 }
 0x29e   :  { %428 = vrcp.f32 %v300_v40  ;;  %v312_v44 = vand.u32 2147483648, %v300_v40  ;;  %v310_v46 = vand.u32 2147483647, %v300_v40  ;;  %vm306_vm2 = vweird.f32 %v300_v40 }
 0x2a0   :  { %v313_v48 = vor.u32 1.1754944e-38, %v312_v44  ;;  %vm311_vm4 = vcmp.eq.f32.partialorder %v310_v46, 8.507059e+37 }
 0x2a4   :  { %v429_v41 = vpop.eup %428 }
 0x2a5   :  { %v302_v42 = vmul.f32 %v429_v41, %v300_v40  ;;  %vm307_vm1 = vweird.f32 %v429_v41 }
 0x2a6   :  { %vm308_vm3 = vmor %vm306_vm2, %vm307_vm1 }
 0x2a7   :  { %v303_v43 = vsub.f32 1.0, %v302_v42 }
 0x2a9   :  { %v304_v45 = vmul.f32 %v429_v41, %v303_v43 }
 0x2ab   :  { %v305_v47 = vadd.f32 %v429_v41, %v304_v45 }
 0x2ad   :  { %v309_v49 = vsel %vm308_vm3, %v429_v41, %v305_v47 }
 0x2ae   :  { %v314_v50 = vsel %vm311_vm4, %v313_v48, %v309_v49 }
 0x2af   :  { %v315_v51 = vmul.f32 %v427_v39, %v314_v50 }
 0x2b1   :  { %v316_v52 = vpack.c.bf16 %v315_v51, %v315_v51 }
 0x2b3   :  { %317 = vst [vmem:[%s616_s5] sm:$0xf] %v316_v52 }
 0x2b4   :  { %322 = vsyncpa [#allocation3], 1 }
 0x2b5   :  { %323 = vsyncpa [#allocation5], 1 }
 0x2b6   :  { %324 = vsyncpa [#allocation8], 1 }

</bundles_post_ra>
